<compile_context>
chip_gen: v7x
topology: tpu7x:2x2x1
jax: 0.10.0
libtpu: 0.0.40
codegen_flags: <defaults>
</compile_context>

<pallas_src>
import functools

import jax
import jax.numpy as jnp
from jax.experimental import pallas as pl
from jax.experimental.pallas import tpu as pltpu

LANE = 128      # vreg lane width (last dim)
SUBLANE = 8     # f32 sublane tile (second-to-last dim)
TB_MAX = 2048   # max batch-tile rows (VMEM use at this size is ~1-2 MiB)


def _round_up(x, m):
    return ((x + m - 1) // m) * m


def _cdiv(a, b):
    return (a + b - 1) // b


# --------------------------------------------------------------------------- #
# Kernel
# --------------------------------------------------------------------------- #
def critic_kernel(state_ref, action_ref, w1s_ref, w1a_ref, b1_ref,
                  w2_ref, b2_ref, w3_ref, b3_ref, o_ref):
    mx_dtype = w2_ref.dtype          # bf16 on the fast path, f32 on the exact path
    ew_dtype = b1_ref.dtype          # elementwise (bias-add / ReLU) dtype
    hi = jax.lax.Precision.HIGHEST
    prec23 = hi if mx_dtype == jnp.float32 else None

    # Layer 1: torch.cat([state, action], 1) @ W1 computed as the sum of two
    # partial contractions against the split rows of W1 (exactly equal).
    # K is tiny (state_dim + action_dim), so f32/HIGHEST here is free.
    h1 = (jnp.dot(state_ref[...], w1s_ref[...],
                  preferred_element_type=jnp.float32, precision=hi)
          + jnp.dot(action_ref[...], w1a_ref[...],
                    preferred_element_type=jnp.float32, precision=hi))
    h1 = jnp.maximum(h1.astype(ew_dtype) + b1_ref[...], 0).astype(mx_dtype)

    # Layer 2 (MXU, f32 accumulation).
    h2 = jnp.dot(h1, w2_ref[...],
                 preferred_element_type=jnp.float32, precision=prec23)
    h2 = jnp.maximum(h2.astype(ew_dtype) + b2_ref[...], 0).astype(mx_dtype)

    # Layer 3: narrow output (out_pad lanes, typically 8), bias-add in f32.
    out = jnp.dot(h2, w3_ref[...],
                  preferred_element_type=jnp.float32, precision=prec23)
    o_ref[...] = (out + b3_ref[...]).astype(o_ref.dtype)


# --------------------------------------------------------------------------- #
# Wrapper
# --------------------------------------------------------------------------- #
@functools.partial(jax.jit, static_argnames=("output_size",))
def critic_forward(state, action, kernel_params, *, output_size):
    """Run the 3-layer critic MLP. `kernel_params` come from prepare_kernel_params."""
    w1s, w1a, b1, w2, b2, w3, b3 = kernel_params
    B, state_dim = state.shape
    action_dim = action.shape[1]
    h_pad = w2.shape[0]
    out_pad = w3.shape[1]

    # Batch tiling: pad only to the f32 sublane tile (8). Single tile for
    # B <= TB_MAX (per-step overhead dominates this tiny MLP); otherwise split
    # into the minimum number of near-equal tiles (>=2 tiles -> both v7x cores
    # via the "parallel" axis) with minimal padding waste.
    b8 = _round_up(B, SUBLANE)
    if b8 <= TB_MAX:
        n_tiles = 1
        tb = b8
    else:
        n_tiles = _cdiv(b8, TB_MAX)
        tb = _round_up(_cdiv(b8, n_tiles), SUBLANE)
    b_pad = tb * n_tiles
    if b_pad != B:
        state = jnp.pad(state, ((0, b_pad - B), (0, 0)))
        action = jnp.pad(action, ((0, b_pad - B), (0, 0)))

    const = lambda i: (0, 0)   # weights/biases: same block every step -> VMEM-resident

    out = pl.pallas_call(
        critic_kernel,
        out_shape=jax.ShapeDtypeStruct((b_pad, out_pad), jnp.float32),
        grid_spec=pltpu.PrefetchScalarGridSpec(
            num_scalar_prefetch=0,
            grid=(n_tiles,),
            in_specs=[
                pl.BlockSpec((tb, state_dim), lambda i: (i, 0)),
                pl.BlockSpec((tb, action_dim), lambda i: (i, 0)),
                pl.BlockSpec((state_dim, h_pad), const),
                pl.BlockSpec((action_dim, h_pad), const),
                pl.BlockSpec((1, h_pad), const),
                pl.BlockSpec((h_pad, h_pad), const),
                pl.BlockSpec((1, h_pad), const),
                pl.BlockSpec((h_pad, out_pad), const),
                pl.BlockSpec((1, out_pad), const),
            ],
            out_specs=pl.BlockSpec((tb, out_pad), lambda i: (i, 0)),
        ),
        compiler_params=pltpu.CompilerParams(
            dimension_semantics=("parallel",)),
    )(state, action, w1s, w1a, b1, w2, b2, w3, b3)

    if b_pad != B or out_pad != output_size:
        out = out[:B, :output_size]
    return out


# --------------------------------------------------------------------------- #
# Parameter construction
# --------------------------------------------------------------------------- #
def init_critic_params(key, input_size, hidden_size, output_size):
    """nn.Linear-style init (U(-1/sqrt(fan_in), 1/sqrt(fan_in))).
    Weights stored (in, out), biases (out,); these are the 'reference' f32 params."""
    def linear(k, fan_in, fan_out):
        kw, kb = jax.random.split(k)
        bound = 1.0 / jnp.sqrt(float(fan_in))
        w = jax.random.uniform(kw, (fan_in, fan_out), jnp.float32, -bound, bound)
        b = jax.random.uniform(kb, (fan_out,), jnp.float32, -bound, bound)
        return w, b

    k1, k2, k3 = jax.random.split(key, 3)
    w1, b1 = linear(k1, input_size, hidden_size)
    w2, b2 = linear(k2, hidden_size, hidden_size)
    w3, b3 = linear(k3, hidden_size, output_size)
    return (w1, b1, w2, b2, w3, b3)


def prepare_kernel_params(params, state_dim, matmul_dtype=jnp.bfloat16):
    """Split W1 (fuses the concat) and pad feature dims.

    Hidden dim is padded to the 128-lane width; the output dim only to the
    8-sublane tile (so only ~real lanes are written back to HBM). Zero padding
    is exact: padded hidden lanes have bias 0 (ReLU(0)=0) and the matching
    padded rows of W2/W3 are 0, so padded lanes never touch real outputs.
    W2/W3 and the layer-1/2 biases are stored in `matmul_dtype` (bf16 for the
    MXU/VPU fast path on v6e/v7x; pass jnp.float32 for the exact / v5e path).
    Layer-1 weights and the final bias stay f32.
    """
    w1, b1, w2, b2, w3, b3 = params
    hidden = w1.shape[1]
    output_size = w3.shape[1]
    h_pad = _round_up(hidden, LANE)
    out_pad = _round_up(output_size, SUBLANE)

    def pad2(a, rows, cols):
        return jnp.pad(a, ((0, rows - a.shape[0]), (0, cols - a.shape[1])))

    w1s = pad2(w1[:state_dim], state_dim, h_pad)                       # f32, K tiny
    w1a = pad2(w1[state_dim:], w1.shape[0] - state_dim, h_pad)         # f32
    b1p = pad2(b1[None, :], 1, h_pad).astype(matmul_dtype)             # ew dtype
    w2p = pad2(w2, h_pad, h_pad).astype(matmul_dtype)
    b2p = pad2(b2[None, :], 1, h_pad).astype(matmul_dtype)             # ew dtype
    w3p = pad2(w3, h_pad, out_pad).astype(matmul_dtype)
    b3p = pad2(b3[None, :], 1, out_pad)                                # f32
    return (w1s, w1a, b1p, w2p, b2p, w3p, b3p)


def critic_reference(state, action, params):
    hi = jax.lax.Precision.HIGHEST
    w1, b1, w2, b2, w3, b3 = params
    x = jnp.concatenate([state, action], axis=1)
    x = jnp.maximum(jnp.dot(x, w1, precision=hi) + b1, 0.0)
    x = jnp.maximum(jnp.dot(x, w2, precision=hi) + b2, 0.0)
    return jnp.dot(x, w3, precision=hi) + b3


# --------------------------------------------------------------------------- #
# Demo / self-check
# --------------------------------------------------------------------------- #
if __name__ == "__main__":
    # DDPG-critic-like shapes: state_dim=3, action_dim=1, hidden=32, output=1.
    batch = 8
    state_dim, action_dim = 3, 1
    input_size = state_dim + action_dim
    hidden_size, output_size = 32, 1

    key = jax.random.PRNGKey(0)
    k_s, k_a, k_p, k_s2, k_a2, k_s3, k_a3 = jax.random.split(key, 7)

    params = init_critic_params(k_p, input_size, hidden_size, output_size)
    kp_f32 = prepare_kernel_params(params, state_dim, matmul_dtype=jnp.float32)
    kp_bf16 = prepare_kernel_params(params, state_dim, matmul_dtype=jnp.bfloat16)

    state = jax.random.normal(k_s, (batch, state_dim), jnp.float32)
    action = jax.random.normal(k_a, (batch, action_dim), jnp.float32)
    ref = critic_reference(state, action, params)

    # Exact f32-matmul path (single tile, no batch padding).
    out_f32 = critic_forward(state, action, kp_f32, output_size=output_size)
    jax.block_until_ready(out_f32)
    assert out_f32.shape == (batch, output_size)
    assert jnp.allclose(out_f32, ref, atol=1e-5), "f32 path mismatch vs reference"

    # bf16-on-MXU path (f32 accumulation, bf16 bias-add/ReLU).
    out_bf16 = critic_forward(state, action, kp_bf16, output_size=output_size)
    jax.block_until_ready(out_bf16)
    assert jnp.allclose(out_bf16, ref, atol=3e-2, rtol=3e-2), "bf16 path mismatch"

    # Non-multiple batch: exercises minimal (to-8) padding + row slice.
    big_b = 300
    state2 = jax.random.normal(k_s2, (big_b, state_dim), jnp.float32)
    action2 = jax.random.normal(k_a2, (big_b, action_dim), jnp.float32)
    ref2 = critic_reference(state2, action2, params)
    out2 = critic_forward(state2, action2, kp_bf16, output_size=output_size)
    jax.block_until_ready(out2)
    assert out2.shape == (big_b, output_size)
    assert jnp.allclose(out2, ref2, atol=3e-2, rtol=3e-2), "padded-batch bf16 mismatch"

    # Large batch: exercises the multi-tile batch grid (>=2 parallel tiles).
    huge_b = 5000
    state3 = jax.random.normal(k_s3, (huge_b, state_dim), jnp.float32)
    action3 = jax.random.normal(k_a3, (huge_b, action_dim), jnp.float32)
    ref3 = critic_reference(state3, action3, params)
    out3 = critic_forward(state3, action3, kp_bf16, output_size=output_size)
    jax.block_until_ready(out3)
    assert out3.shape == (huge_b, output_size)
    assert jnp.allclose(out3, ref3, atol=3e-2, rtol=3e-2), "multi-tile bf16 mismatch"

    print("KERNEL_OK")
</pallas_src>

<mosaic_0001>
module attributes {stable_mosaic.version = 11 : i64} {
  func.func @critic_kernel(%arg0: i32, %arg1: memref<8x3xf32, #tpu.memory_space<vmem>>, %arg2: memref<8x1xf32, #tpu.memory_space<vmem>>, %arg3: memref<3x128xf32, #tpu.memory_space<vmem>>, %arg4: memref<1x128xf32, #tpu.memory_space<vmem>>, %arg5: memref<1x128xf32, #tpu.memory_space<vmem>>, %arg6: memref<128x128xf32, #tpu.memory_space<vmem>>, %arg7: memref<1x128xf32, #tpu.memory_space<vmem>>, %arg8: memref<128x8xf32, #tpu.memory_space<vmem>>, %arg9: memref<1x8xf32, #tpu.memory_space<vmem>>, %arg10: memref<8x8xf32, #tpu.memory_space<vmem>>) attributes {dimension_semantics = [#tpu.dimension_semantics<parallel>], iteration_bounds = array<i64: 1>, scalar_prefetch = 0 : i64, scratch_operands = 0 : i64, tpu.core_type = #tpu.core_type<tc>, window_params = [{transform_indices = @transform_0, window_bounds = array<i64: 8, 3>}, {transform_indices = @transform_1, window_bounds = array<i64: 8, 1>}, {pipeline_mode = #tpu.pipeline_mode<synchronous>, transform_indices = @transform_2, window_bounds = array<i64: 3, 128>}, {pipeline_mode = #tpu.pipeline_mode<synchronous>, transform_indices = @transform_3, window_bounds = array<i64: 1, 128>}, {pipeline_mode = #tpu.pipeline_mode<synchronous>, transform_indices = @transform_4, window_bounds = array<i64: 1, 128>}, {pipeline_mode = #tpu.pipeline_mode<synchronous>, transform_indices = @transform_5, window_bounds = array<i64: 128, 128>}, {pipeline_mode = #tpu.pipeline_mode<synchronous>, transform_indices = @transform_6, window_bounds = array<i64: 1, 128>}, {pipeline_mode = #tpu.pipeline_mode<synchronous>, transform_indices = @transform_7, window_bounds = array<i64: 128, 8>}, {pipeline_mode = #tpu.pipeline_mode<synchronous>, transform_indices = @transform_8, window_bounds = array<i64: 1, 8>}, {transform_indices = @transform_9, window_bounds = array<i64: 8, 8>}]} {
    %c0 = arith.constant 0 : index
    %c0_0 = arith.constant 0 : index
    %0 = vector.load %arg1[%c0, %c0_0] : memref<8x3xf32, #tpu.memory_space<vmem>>, vector<8x3xf32>
    %c0_1 = arith.constant 0 : index
    %c0_2 = arith.constant 0 : index
    %1 = vector.load %arg3[%c0_1, %c0_2] : memref<3x128xf32, #tpu.memory_space<vmem>>, vector<3x128xf32>
    %cst = arith.constant dense<0.000000e+00> : vector<8x128xf32>
    %2 = tpu.matmul %0, %1, %cst {dimension_numbers = #tpu.dot_dimension_numbers<[1], [0], [0], [1], [0, 0, 1, 1], [], []>, precision = #tpu.contract_precision<fp32>} : vector<8x3xf32>, vector<3x128xf32>, vector<8x128xf32> -> vector<8x128xf32>
    %c0_3 = arith.constant 0 : index
    %c0_4 = arith.constant 0 : index
    %3 = vector.load %arg2[%c0_3, %c0_4] : memref<8x1xf32, #tpu.memory_space<vmem>>, vector<8x1xf32>
    %c0_5 = arith.constant 0 : index
    %c0_6 = arith.constant 0 : index
    %4 = vector.load %arg4[%c0_5, %c0_6] : memref<1x128xf32, #tpu.memory_space<vmem>>, vector<1x128xf32>
    %cst_7 = arith.constant dense<0.000000e+00> : vector<8x128xf32>
    %5 = tpu.matmul %3, %4, %cst_7 {dimension_numbers = #tpu.dot_dimension_numbers<[1], [0], [0], [1], [0, 0, 1, 1], [], []>, precision = #tpu.contract_precision<fp32>} : vector<8x1xf32>, vector<1x128xf32>, vector<8x128xf32> -> vector<8x128xf32>
    %6 = arith.addf %2, %5 : vector<8x128xf32>
    %c0_8 = arith.constant 0 : index
    %c0_9 = arith.constant 0 : index
    %7 = vector.load %arg5[%c0_8, %c0_9] : memref<1x128xf32, #tpu.memory_space<vmem>>, vector<1x128xf32>
    %8 = vector.broadcast %7 : vector<1x128xf32> to vector<8x128xf32>
    %9 = arith.addf %6, %8 : vector<8x128xf32>
    %cst_10 = arith.constant 0.000000e+00 : f32
    %10 = vector.broadcast %cst_10 : f32 to vector<8x128xf32>
    %11 = arith.maximumf %9, %10 : vector<8x128xf32>
    %c0_11 = arith.constant 0 : index
    %c0_12 = arith.constant 0 : index
    %12 = vector.load %arg6[%c0_11, %c0_12] : memref<128x128xf32, #tpu.memory_space<vmem>>, vector<128x128xf32>
    %cst_13 = arith.constant dense<0.000000e+00> : vector<8x128xf32>
    %13 = tpu.matmul %11, %12, %cst_13 {dimension_numbers = #tpu.dot_dimension_numbers<[1], [0], [0], [1], [0, 0, 1, 1], [], []>, precision = #tpu.contract_precision<fp32>} : vector<8x128xf32>, vector<128x128xf32>, vector<8x128xf32> -> vector<8x128xf32>
    %c0_14 = arith.constant 0 : index
    %c0_15 = arith.constant 0 : index
    %14 = vector.load %arg7[%c0_14, %c0_15] : memref<1x128xf32, #tpu.memory_space<vmem>>, vector<1x128xf32>
    %15 = vector.broadcast %14 : vector<1x128xf32> to vector<8x128xf32>
    %16 = arith.addf %13, %15 : vector<8x128xf32>
    %cst_16 = arith.constant 0.000000e+00 : f32
    %17 = vector.broadcast %cst_16 : f32 to vector<8x128xf32>
    %18 = arith.maximumf %16, %17 : vector<8x128xf32>
    %c0_17 = arith.constant 0 : index
    %c0_18 = arith.constant 0 : index
    %19 = vector.load %arg8[%c0_17, %c0_18] : memref<128x8xf32, #tpu.memory_space<vmem>>, vector<128x8xf32>
    %cst_19 = arith.constant dense<0.000000e+00> : vector<8x8xf32>
    %20 = tpu.matmul %18, %19, %cst_19 {dimension_numbers = #tpu.dot_dimension_numbers<[1], [0], [0], [1], [0, 0, 1, 1], [], []>, precision = #tpu.contract_precision<fp32>} : vector<8x128xf32>, vector<128x8xf32>, vector<8x8xf32> -> vector<8x8xf32>
    %c0_20 = arith.constant 0 : index
    %c0_21 = arith.constant 0 : index
    %21 = vector.load %arg9[%c0_20, %c0_21] : memref<1x8xf32, #tpu.memory_space<vmem>>, vector<1x8xf32>
    %22 = vector.broadcast %21 : vector<1x8xf32> to vector<8x8xf32>
    %23 = arith.addf %20, %22 : vector<8x8xf32>
    %c0_22 = arith.constant 0 : index
    %c0_23 = arith.constant 0 : index
    %24 = vector.load %arg10[%c0_22, %c0_23] : memref<8x8xf32, #tpu.memory_space<vmem>>, vector<8x8xf32>
    tpu.vector_store %arg10[%c0_22, %c0_23], %23 {strides = array<i32>} : memref<8x8xf32, #tpu.memory_space<vmem>>, vector<8x8xf32>,
    return
  }
  func.func @transform_0(%arg0: i32) -> (i32, i32) {
    %c0_i32 = arith.constant 0 : i32
    %c0_i32_0 = arith.constant 0 : i32
    return %arg0, %c0_i32 : i32, i32
  }
  func.func @transform_1(%arg0: i32) -> (i32, i32) {
    %c0_i32 = arith.constant 0 : i32
    %c0_i32_0 = arith.constant 0 : i32
    return %arg0, %c0_i32 : i32, i32
  }
  func.func @transform_2(%arg0: i32) -> (i32, i32) {
    %c0_i32 = arith.constant 0 : i32
    %c0_i32_0 = arith.constant 0 : i32
    %c0_i32_1 = arith.constant 0 : i32
    return %c0_i32, %c0_i32_0 : i32, i32
  }
  func.func @transform_3(%arg0: i32) -> (i32, i32) {
    %c0_i32 = arith.constant 0 : i32
    %c0_i32_0 = arith.constant 0 : i32
    %c0_i32_1 = arith.constant 0 : i32
    return %c0_i32, %c0_i32_0 : i32, i32
  }
  func.func @transform_4(%arg0: i32) -> (i32, i32) {
    %c0_i32 = arith.constant 0 : i32
    %c0_i32_0 = arith.constant 0 : i32
    %c0_i32_1 = arith.constant 0 : i32
    return %c0_i32, %c0_i32_0 : i32, i32
  }
  func.func @transform_5(%arg0: i32) -> (i32, i32) {
    %c0_i32 = arith.constant 0 : i32
    %c0_i32_0 = arith.constant 0 : i32
    %c0_i32_1 = arith.constant 0 : i32
    return %c0_i32, %c0_i32_0 : i32, i32
  }
  func.func @transform_6(%arg0: i32) -> (i32, i32) {
    %c0_i32 = arith.constant 0 : i32
    %c0_i32_0 = arith.constant 0 : i32
    %c0_i32_1 = arith.constant 0 : i32
    return %c0_i32, %c0_i32_0 : i32, i32
  }
  func.func @transform_7(%arg0: i32) -> (i32, i32) {
    %c0_i32 = arith.constant 0 : i32
    %c0_i32_0 = arith.constant 0 : i32
    %c0_i32_1 = arith.constant 0 : i32
    return %c0_i32, %c0_i32_0 : i32, i32
  }
  func.func @transform_8(%arg0: i32) -> (i32, i32) {
    %c0_i32 = arith.constant 0 : i32
    %c0_i32_0 = arith.constant 0 : i32
    %c0_i32_1 = arith.constant 0 : i32
    return %c0_i32, %c0_i32_0 : i32, i32
  }
  func.func @transform_9(%arg0: i32) -> (i32, i32) {
    %c0_i32 = arith.constant 0 : i32
    %c0_i32_0 = arith.constant 0 : i32
    return %arg0, %c0_i32 : i32, i32
  }
}

</mosaic_0001>

<bundles_post_ra>
// kernel: critic_forward.1
= control target key start
LH: loop header
LB: loop body
LE: loop exit
PB: predicated region body
PF: predicated region fallthrough
CT: control target
= control target key end

     0   :  { %vm40_vm0 = vcmask 1040384   ;;  %vm36_vm1 = vcmask 7168   ;;  %v3312_v0 = vmov 0.0   ;;  %vm3313_vm2 = vmmov 0   ;;  %s4081_s3 = inlined_call_operand.vmem [shape: f32[1,128], index: 3, kind: input, shape index: {}]   ;;  %s4082_s1 = inlined_call_operand.vmem [shape: f32[8,1], index: 1, kind: input, shape index: {}]   ;;  %s4083_s2 = inlined_call_operand.vmem [shape: f32[3,128], index: 2, kind: input, shape index: {}]   ;;  %s4084_s0 = inlined_call_operand.vmem [shape: f32[8,3], index: 0, kind: input, shape index: {}]   ;;  %s4085_s5 = inlined_call_operand.vmem [shape: f32[128,128], index: 5, kind: input, shape index: {}]   ;;  %s4086_s4 = inlined_call_operand.vmem [shape: f32[1,128], index: 4, kind: input, shape index: {}]   ;;  %s4087_s7 = inlined_call_operand.vmem [shape: f32[128,8], index: 7, kind: input, shape index: {}]   ;;  %s4088_s6 = inlined_call_operand.vmem [shape: f32[1,128], index: 6, kind: input, shape index: {}]   ;;  %s4089_s8 = inlined_call_operand.vmem [shape: f32[1,8], index: 8, kind: input, shape index: {}]   ;;  %s4090_s9 = inlined_call_operand.vmem [shape: f32[8,8], index: 9, kind: output, shape index: {}]  }
   0x1   :  { %2519 = vmatprep.subr.mxu0 %v3312_v0  ;;  %v35_v1 = vld [vmem:[%s4081_s3] sm:$0x1]  ;;  %2521 = vmatprep.mubr.msk.f32.mxu0 %vm3313_vm2, %v3312_v0  ;;  %vm494_vm3 = vcmask 1042432   ;;  %vm490_vm4 = vcmask 23552   ;;  %v954_v30 = vld [vmem:[%s4085_s5 + $0x8] sm:$0xff]  ;;  %v3314_v34 = vmov 0.0|0.0  }
   0x2   :  { %v34_v2 = vld [vmem:[%s4082_s1] sm:$0xff]  ;;  %v42_v4 = vsel %vm40_vm0, %v35_v1, 0  ;;  %2524 = vmatprep.subr.mxu1 %v3312_v0  ;;  %2526 = vmatprep.mubr.msk.f32.mxu1 %vm3313_vm2, %v3312_v0  ;;  %v980_v32 = vand.u32 4294901760, %v954_v30  ;;  %v955_v35 = vld [vmem:[%s4085_s5 + $0x10] sm:$0xff]  ;;  %v956_v36 = vld [vmem:[%s4085_s5 + $0x18] sm:$0xff]  ;;  %vm2282_vm5 = vcmask 64512  }
   0x3   :  { %v33_v3 = vld [vmem:[%s4083_s2] sm:$0x7]  ;;  %v38_v5 = vsel %vm36_vm1, %v34_v2, 0  ;;  %v45_v8 = vand.u32 4294901760, %v42_v4  ;;  %v983_v39 = vand.u32 4294901760, %v955_v35  ;;  %v986_v40 = vand.u32 4294901760, %v956_v36 }
   0x4   :  { %v496_v6 = vsel %vm494_vm3, %v33_v3, 0  ;;  %v32_v7 = vld [vmem:[%s4084_s0] sm:$0xff]  ;;  %v110_v9 = vand.u32 4294901760, %v38_v5  ;;  %v3436_v38 = vsub.f32 %v954_v30, %v980_v32  ;;  %v958_v43 = vld [vmem:[%s4085_s5 + $0x28] sm:$0xff]  ;;  %v959_v49 = vld [vmem:[%s4085_s5 + $0x30] sm:$0xff] }
   0x5   :  { %v492_v10 = vsel %vm490_vm4, %v32_v7, 0  ;;  %v499_v11 = vand.u32 4294901760, %v496_v6  ;;  %2520 = vmatpush3.msra.mxu0 %v45_v8  ;;  %v122_v13 = vsub.f32 %v42_v4, %v45_v8  ;;  %v953_v29 = vld [vmem:[%s4085_s5] sm:$0xff]  ;;  %v3439_v41 = vpack.c.bf16 %v986_v40, %v983_v39  ;;  %v960_v50 = vld [vmem:[%s4085_s5 + $0x38] sm:$0xff]  ;;  %v962_v57 = vld [vmem:[%s4085_s5 + $0x48] sm:$0xff] }
   0x6   :  { %v111_v12 = vsub.f32 %v38_v5, %v110_v9  ;;  %v564_v14 = vand.u32 4294901760, %v492_v10  ;;  %2529 = vmatprep.subr.mxu0 %v3312_v0  ;;  %v977_v31 = vand.u32 4294901760, %v953_v29  ;;  %v957_v42 = vld [vmem:[%s4085_s5 + $0x20] sm:$0xff]  ;;  %v3448_v44 = vsub.f32 %v955_v35, %v983_v39  ;;  %v963_v63 = vld [vmem:[%s4085_s5 + $0x50] sm:$0xff]  ;;  %v964_v1 = vld [vmem:[%s4085_s5 + $0x58] sm:$0xff] }
   0x7   :  { %v123_v16 = vand.u32 4294901760, %v122_v13  ;;  %v576_v17 = vsub.f32 %v496_v6, %v499_v11  ;;  %v3450_v45 = vsub.f32 %v956_v36, %v986_v40  ;;  %v989_v46 = vand.u32 4294901760, %v957_v42  ;;  %v961_v56 = vld [vmem:[%s4085_s5 + $0x40] sm:$0xff]  ;;  %v966_v6 = vld [vmem:[%s4085_s5 + $0x68] sm:$0xff] }
   0x8   :  { %v112_v15 = vand.u32 4294901760, %v111_v12  ;;  %v565_v20 = vsub.f32 %v492_v10, %v564_v14  ;;  %v3423_v33 = vpack.c.bf16 %v980_v32, %v977_v31  ;;  %v3434_v37 = vsub.f32 %v953_v29, %v977_v31  ;;  %v965_v5 = vld [vmem:[%s4085_s5 + $0x60] sm:$0xff]  ;;  %v967_v10 = vld [vmem:[%s4085_s5 + $0x70] sm:$0xff] }
   0x9   :  { %v124_v19 = vsub.f32 %v122_v13, %v123_v16  ;;  %v577_v23 = vand.u32 4294901760, %v576_v17  ;;  %v992_v47 = vand.u32 4294901760, %v958_v43  ;;  %v3462_v51 = vsub.f32 %v957_v42, %v989_v46 }
   0xa   :  { %v113_v18 = vsub.f32 %v111_v12, %v112_v15  ;;  %v566_v24 = vand.u32 4294901760, %v565_v20  ;;  %v995_v53 = vand.u32 4294901760, %v959_v49  ;;  %v998_v54 = vand.u32 4294901760, %v960_v50 }
   0xb   :  { %v125_v22 = vand.u32 4294901760, %v124_v19  ;;  %v578_v25 = vsub.f32 %v576_v17, %v577_v23  ;;  %v3453_v48 = vpack.c.bf16 %v992_v47, %v989_v46  ;;  %v3464_v52 = vsub.f32 %v958_v43, %v992_v47 }
   0xc   :  { %v114_v21 = vand.u32 4294901760, %v113_v18  ;;  %v567_v26 = vsub.f32 %v565_v20, %v566_v24  ;;  %v3467_v55 = vpack.c.bf16 %v998_v54, %v995_v53  ;;  %v3476_v58 = vsub.f32 %v959_v49, %v995_v53 }
   0xd   :  { %2525 = vmatpush3.msra.mxu1 %v125_v22  ;;  %v579_v27 = vand.u32 4294901760, %v578_v25  ;;  %v3478_v59 = vsub.f32 %v960_v50, %v998_v54  ;;  %v1001_v60 = vand.u32 4294901760, %v961_v56  ;;  %v1004_v61 = vand.u32 4294901760, %v962_v57 }
   0xe   :  { %2522 = vmatmul.mubr.f32.vlgmr.msra.gmra.mrb[0].mxu0 %v114_v21  ;;  %2527 = vmatmul.mubr.f32.vlgmr.msra.gmra.mrb[0].mxu1 %v110_v9  ;;  %v568_v28 = vand.u32 4294901760, %v567_v26  ;;  %v1007_v2 = vand.u32 4294901760, %v963_v63  ;;  %v1010_v3 = vand.u32 4294901760, %v964_v1  ;;  %v1013_v7 = vand.u32 4294901760, %v965_v5 }
   0xf   :  { %2530 = vmatpush3.msra.mxu0 %v122_v13  ;;  %2534 = vmatprep.subr.mxu1 %v3312_v0  ;;  %v3481_v62 = vpack.c.bf16 %v1004_v61, %v1001_v60  ;;  %v4102_v40 = vand.u32 4294901760, %v3462_v51  ;;  %v4101_v42 = vand.u32 4294901760, %v3464_v52  ;;  %v4100_v53 = vand.u32 4294901760, %v3476_v58 }
  0x10   :  { %2531 = vmatprep.mubr.msk.f32.mxu0 %vm3313_vm2, %v3312_v0  ;;  %2535 = vmatpush3.msra.mxu1 %v45_v8  ;;  %v3491_v4 = vpack.c.bf16 %v1010_v3, %v1007_v2  ;;  %v3517_v18 = vsub.f32 %v963_v63, %v1007_v2  ;;  %v3519_v19 = vsub.f32 %v964_v1, %v1010_v3  ;;  %v4099_v54 = vand.u32 4294901760, %v3478_v59 }
  0x11   :  { %2539 = vmatprep.subr.mxu0 %v3312_v0  ;;  %2536 = vmatprep.mubr.msk.f32.mxu1 %vm3313_vm2, %v3312_v0  ;;  %v1099_v46 = vsub.f32 %v3462_v51, %v4102_v40  ;;  %v1106_v47 = vsub.f32 %v3464_v52, %v4101_v42 }
  0x12   :  { %2532 = vmatmul.mubr.f32.vlgmr.msra.gmra.mrb[2].mxu0 %v111_v12  ;;  %2537 = vmatmul.mubr.f32.vlgmr.msra.gmra.mrb[2].mxu1 %v112_v15  ;;  %v1019_v12 = vand.u32 4294901760, %v967_v10  ;;  %v4105_v15 = vand.u32 4294901760, %v3436_v38 }
  0x13   :  { %2540 = vmatpush3.msra.mxu0 %v123_v16  ;;  %2544 = vmatprep.subr.mxu1 %v3312_v0  ;;  %v3513_v16 = vsub.f32 %v961_v56, %v1001_v60  ;;  %v1100_v49 = vand.u32 4294901760, %v1099_v46  ;;  %v1107_v50 = vand.u32 4294901760, %v1106_v47  ;;  %v1120_v60 = vsub.f32 %v3478_v59, %v4099_v54 }
  0x14   :  { %2541 = vmatprep.mubr.msk.f32.mxu0 %vm3313_vm2, %v3312_v0  ;;  %2545 = vmatpush3.msra.mxu1 %v45_v8  ;;  %v1016_v8 = vand.u32 4294901760, %v966_v6  ;;  %v1078_v26 = vsub.f32 %v3436_v38, %v4105_v15 }
  0x15   :  { %2549 = vmatprep.subr.mxu0 %v3312_v0  ;;  %2546 = vmatprep.mubr.msk.f32.mxu1 %vm3313_vm2, %v3312_v0  ;;  %v3561_v56 = vpack.c.bf16 %v1107_v50, %v1100_v49  ;;  %v1121_v63 = vand.u32 4294901760, %v1120_v60  ;;  %v4098_v1 = vand.u32 4294901760, %v3513_v16 }
  0x16   :  { %2542 = vmatmul.mubr.f32.vlgmr.msra.gmra.mrb[4].mxu0 %v110_v9  ;;  %2547 = vmatmul.mubr.f32.vlgmr.msra.gmra.mrb[4].mxu1 %v110_v9  ;;  %v3501_v9 = vpack.c.bf16 %v1016_v8, %v1013_v7  ;;  %v3523_v21 = vsub.f32 %v966_v6, %v1016_v8  ;;  %v1079_v30 = vand.u32 4294901760, %v1078_v26 }
  0x17   :  { %2550 = vmatpush3.msra.mxu0 %v499_v11  ;;  %2554 = vmatprep.subr.mxu1 %v3312_v0 }
  0x18   :  { %2551 = vmatprep.mubr.msk.f32.mxu0 %vm3313_vm2, %v3312_v0  ;;  %2555 = vmatpush3.msra.mxu1 %v579_v27  ;;  %v4104_v27 = vand.u32 4294901760, %v3448_v44 }
  0x19   :  { %2559 = vmatprep.subr.mxu0 %v3312_v0  ;;  %2556 = vmatprep.mubr.msk.f32.mxu1 %vm3313_vm2, %v3312_v0 }
  0x1a   :  { %2552 = vmatmul.mubr.f32.vlgmr.msra.gmra.mrb[6].mxu0 %v568_v28  ;;  %2557 = vmatmul.mubr.f32.vlgmr.msra.gmra.mrb[6].mxu1 %v564_v14  ;;  %v4103_v28 = vand.u32 4294901760, %v3450_v45  ;;  %v1085_v31 = vsub.f32 %v3448_v44, %v4104_v27 }
  0x1b   :  { %2560 = vmatpush3.msra.mxu0 %v576_v17  ;;  %2564 = vmatprep.subr.mxu1 %v3312_v0  ;;  %v3515_v17 = vsub.f32 %v962_v57, %v1004_v61  ;;  %v1113_v57 = vsub.f32 %v3476_v58, %v4100_v53 }
  0x1c   :  { %2561 = vmatprep.mubr.msk.f32.mxu0 %vm3313_vm2, %v3312_v0  ;;  %2565 = vmatpush3.msra.mxu1 %v499_v11  ;;  %v1092_v32 = vsub.f32 %v3450_v45, %v4103_v28  ;;  %v1086_v36 = vand.u32 4294901760, %v1085_v31  ;;  %v4093_v31 = vand.u32 4294901760, %v3523_v21 }
  0x1d   :  { %2569 = vmatprep.subr.mxu0 %v3312_v0  ;;  %2566 = vmatprep.mubr.msk.f32.mxu1 %vm3313_vm2, %v3312_v0  ;;  %v1114_v61 = vand.u32 4294901760, %v1113_v57  ;;  %v4097_v2 = vand.u32 4294901760, %v3515_v17 }
  0x1e   :  { %2562 = vmatmul.mubr.f32.vlgmr.msra.gmra.mrb[8].mxu0 %v565_v20  ;;  %2567 = vmatmul.mubr.f32.vlgmr.msra.gmra.mrb[8].mxu1 %v566_v24  ;;  %v3521_v20 = vsub.f32 %v965_v5, %v1013_v7  ;;  %v1093_v39 = vand.u32 4294901760, %v1092_v32  ;;  %v1127_v5 = vsub.f32 %v3513_v16, %v4098_v1 }
  0x1f   :  { %2570 = vmatpush3.msra.mxu0 %v577_v23  ;;  %2574 = vmatprep.subr.mxu1 %v3312_v0  ;;  %v3527_v23 = vsub.f32 %v967_v10, %v1019_v12  ;;  %v3571_v3 = vpack.c.bf16 %v1121_v63, %v1114_v61  ;;  %v1134_v6 = vsub.f32 %v3515_v17, %v4097_v2  ;;  %v4096_v10 = vand.u32 4294901760, %v3517_v18 }
  0x20   :  { %2571 = vmatprep.mubr.msk.f32.mxu0 %vm3313_vm2, %v3312_v0  ;;  %2575 = vmatpush3.msra.mxu1 %v499_v11  ;;  %v968_v11 = vld [vmem:[%s4085_s5 + $0x78] sm:$0xff]  ;;  %v3551_v43 = vpack.c.bf16 %v1093_v39, %v1086_v36  ;;  %v1128_v7 = vand.u32 4294901760, %v1127_v5  ;;  %v1162_v39 = vsub.f32 %v3523_v21, %v4093_v31 }
  0x21   :  { %2576 = vmatprep.mubr.msk.f32.mxu1 %vm3313_vm2, %v3312_v0  ;;  %2999 = vmatprep.subr.bf16.mxu0 %v3314_v34  ;;  %v1022_v13 = vand.u32 4294901760, %v968_v11  ;;  %v1135_v8 = vand.u32 4294901760, %v1134_v6  ;;  %v4092_v49 = vand.u32 4294901760, %v3527_v23 }
  0x22   :  { %2572 = vmatmul.mubr.f32.vlgmr.msra.gmra.mrb[10].mxu0 %v564_v14  ;;  %2577 = vmatmul.mubr.f32.vlgmr.msra.gmra.mrb[10].mxu1 %v564_v14  ;;  %v4106_v14 = vand.u32 4294901760, %v3434_v37  ;;  %v1163_v47 = vand.u32 4294901760, %v1162_v39 }
  0x23   :  { %2611 = vmatprep.mubr.msk.f32.mxu0 %vm3313_vm2, %v3312_v0  ;;  %2821 = vmatprep.mubr.msk.f32.mxu1 %vm3313_vm2, %v3312_v0  ;;  %v3525_v22 = vpack.c.bf16 %v1022_v13, %v1019_v12  ;;  %v3529_v24 = vsub.f32 %v968_v11, %v1022_v13  ;;  %v4095_v11 = vand.u32 4294901760, %v3519_v19  ;;  %v3581_v12 = vpack.c.bf16 %v1135_v8, %v1128_v7 }
  0x24   :  { %3143 = vmatprep.subr.bf16.mxu1 %v3314_v34  ;;  %3001 = vmatpush3.bf16.msra.mxu0 %v3423_v33  ;;  %v1071_v25 = vsub.f32 %v3434_v37, %v4106_v14  ;;  %v1141_v13 = vsub.f32 %v3517_v18, %v4096_v10  ;;  %v1169_v60 = vsub.f32 %v3527_v23, %v4092_v49 }
  0x25   :  { %3002 = vmatprep.subr.bf16.mxu0 %v3314_v34  ;;  %v4091_v50 = vand.u32 4294901760, %v3529_v24  ;;  %v3048_v7 = vpack.c.bf16 %v3436_v38, %v3434_v37  ;;  %v3051_v8 = vpack.c.bf16 %v3450_v45, %v3448_v44  ;;  %v3069_v39 = vpack.c.bf16 %v3529_v24, %v3527_v23 }
  0x26   :  { %v1072_v29 = vand.u32 4294901760, %v1071_v25  ;;  %v1148_v25 = vsub.f32 %v3519_v19, %v4095_v11  ;;  %v1142_v26 = vand.u32 4294901760, %v1141_v13  ;;  %v1170_v63 = vand.u32 4294901760, %v1169_v60 }
  0x27   :  { %v1176_v61 = vsub.f32 %v3529_v24, %v4091_v50  ;;  %v3054_v13 = vpack.c.bf16 %v3464_v52, %v3462_v51 }
  0x28   :  { %3004 = vmatpush3.bf16.msra.mxu0 %v3439_v41  ;;  %v3547_v35 = vpack.c.bf16 %v1079_v30, %v1072_v29  ;;  %v1149_v29 = vand.u32 4294901760, %v1148_v25  ;;  %v4094_v30 = vand.u32 4294901760, %v3521_v20  ;;  %v3057_v25 = vpack.c.bf16 %v3478_v59, %v3476_v58 }
  0x29   :  { %3005 = vmatprep.subr.bf16.mxu0 %v3314_v34  ;;  %v1177_v5 = vand.u32 4294901760, %v1176_v61 }
  0x2a   :  { %v3591_v32 = vpack.c.bf16 %v1149_v29, %v1142_v26  ;;  %v1155_v36 = vsub.f32 %v3521_v20, %v4094_v30  ;;  %v3060_v26 = vpack.c.bf16 %v3515_v17, %v3513_v16  ;;  %v3063_v29 = vpack.c.bf16 %v3519_v19, %v3517_v18 }
  0x2b   :  { %v3609_v6 = vpack.c.bf16 %v1177_v5, %v1170_v63 }
  0x2c   :  { %3007 = vmatpush3.bf16.msra.mxu0 %v3453_v48  ;;  %v1156_v46 = vand.u32 4294901760, %v1155_v36  ;;  %v3066_v36 = vpack.c.bf16 %v3523_v21, %v3521_v20 }
  0x2d   :  { %3008 = vmatprep.subr.bf16.mxu0 %v3314_v34 }
  0x2e   :  { %v3601_v57 = vpack.c.bf16 %v1163_v47, %v1156_v46 }
  0x30   :  { %3010 = vmatpush3.bf16.msra.mxu0 %v3467_v55 }
  0x31   :  { %3011 = vmatprep.subr.bf16.mxu0 %v3314_v34 }
  0x34   :  { %3013 = vmatpush3.bf16.msra.mxu0 %v3481_v62 }
  0x35   :  { %3014 = vmatprep.subr.bf16.mxu0 %v3314_v34 }
  0x38   :  { %3016 = vmatpush3.bf16.msra.mxu0 %v3491_v4 }
  0x39   :  { %3017 = vmatprep.subr.bf16.mxu0 %v3314_v34 }
  0x3c   :  { %3019 = vmatpush3.bf16.msra.mxu0 %v3501_v9 }
  0x3d   :  { %3020 = vmatprep.subr.bf16.mxu0 %v3314_v34 }
  0x40   :  { %3022 = vmatpush3.bf16.msra.mxu0 %v3525_v22 }
  0x41   :  { %3023 = vmatprep.subr.bf16.mxu0 %v3314_v34 }
  0xe1   :  { %v116_v46 = vpop.f32.mrb[0].mxu0  ;;  %v192_v60 = vpop.f32.mrb[0].mxu1 }
  0xe2   :  { %v2523_v47 = vpop.f32.mrb[1].mxu0  ;;  %v193_v61 = vadd.f32 %v192_v60, %v116_v46  ;;  %v2528_v63 = vpop.f32.mrb[1].mxu1 }
  0xe5   :  { %v266_v5 = vpop.f32.mrb[2].mxu0  ;;  %v340_v31 = vpop.f32.mrb[2].mxu1 }
  0xe6   :  { %v267_v50 = vadd.f32 %v266_v5, %v193_v61  ;;  %v2533_v49 = vpop.f32.mrb[3].mxu0  ;;  %v2538_v30 = vpop.f32.mrb[3].mxu1 }
  0xe8   :  { %v341_v11 = vadd.f32 %v340_v31, %v267_v50 }
  0xe9   :  { %v414_v10 = vpop.f32.mrb[4].mxu0  ;;  %v486_v54 = vpop.f32.mrb[4].mxu1 }
  0xea   :  { %v415_v2 = vadd.f32 %v414_v10, %v341_v11  ;;  %v2543_v1 = vpop.f32.mrb[5].mxu0  ;;  %v2548_v53 = vpop.f32.mrb[5].mxu1 }
  0xeb   :  { %v2288_v53 = vld [vmem:[%s4086_s4] ss:$0 sm:$0xff] }
  0xec   :  { %v487_v42 = vadd.f32 %v486_v54, %v415_v2 }
  0xed   :  { %v570_v40 = vpop.f32.mrb[6].mxu0  ;;  %v646_v15 = vpop.f32.mrb[6].mxu1 }
  0xee   :  { %v571_v28 = vadd.f32 %v570_v40, %v487_v42  ;;  %v2553_v27 = vpop.f32.mrb[7].mxu0  ;;  %v2558_v47 = vpop.f32.mrb[7].mxu1 }
  0xf0   :  { %v647_v14 = vadd.f32 %v646_v15, %v571_v28 }
  0xf1   :  { %v720_v46 = vpop.f32.mrb[8].mxu0  ;;  %v794_v61 = vpop.f32.mrb[8].mxu1 }
  0xf2   :  { %v721_v60 = vadd.f32 %v720_v46, %v647_v14  ;;  %v2563_v63 = vpop.f32.mrb[9].mxu0  ;;  %v2568_v49 = vpop.f32.mrb[9].mxu1 }
  0xf3   :  { %v1625_v63 = vld [vmem:[%s4087_s7 + $0x38] sm:$0xff] }
  0xf4   :  { %v795_v5 = vadd.f32 %v794_v61, %v721_v60  ;;  %v1624_v60 = vld [vmem:[%s4087_s7 + $0x30] sm:$0xff]  ;;  %v1626_v61 = vld [vmem:[%s4087_s7 + $0x40] sm:$0xff] }
  0xf5   :  { %v868_v30 = vpop.f32.mrb[10].mxu0  ;;  %v940_v10 = vpop.f32.mrb[10].mxu1 }
  0xf6   :  { %v869_v31 = vadd.f32 %v868_v30, %v795_v5  ;;  %v2573_v50 = vpop.f32.mrb[11].mxu0  ;;  %v2578_v54 = vpop.f32.mrb[11].mxu1 }
  0xf7   :  { %v1627_v50 = vld [vmem:[%s4087_s7 + $0x48] sm:$0xff] }
  0xf8   :  { %v941_v40 = vadd.f32 %v940_v10, %v869_v31 }
  0xfa   :  { %v951_v27 = vadd.f32 %v2288_v53, %v941_v40 }
  0xfc   :  { %v952_v42 = vmax.f32 %v951_v27, 0.0  ;;  %v1660_v27 = vand.u32 4294901760, %v1624_v60 }
  0xfe   :  { %v3630_v1 = vand.u32 4294901760, %v952_v42 }
 0x100   :  { %v3633_v14 = vsub.f32 %v952_v42, %v3630_v1  ;;  %v1663_v42 = vand.u32 4294901760, %v1625_v63 }
 0x102   :  { %v1059_v15 = vand.u32 4294901760, %v3633_v14 }
 0x104   :  { %v1060_v28 = vsub.f32 %v3633_v14, %v1059_v15 }
 0x106   :  { %v1061_v2 = vand.u32 4294901760, %v1060_v28  ;;  %v1666_v28 = vand.u32 4294901760, %v1626_v61 }
 0x108   :  { %2612 = vmatmul.mubr.f32.vlgmr.msra.gmra.mrb[12].mxu0 %v1061_v2  ;;  %v1669_v2 = vand.u32 4294901760, %v1627_v50 }
 0x109   :  { %3025 = vmatpush3.bf16.msra.mxu0 %v3547_v35  ;;  %2646 = vmatprep.mubr.msk.f32.mxu0 %vm3313_vm2, %v3312_v0  ;;  %v1618_v35 = vld [vmem:[%s4087_s7] sm:$0xff] }
 0x10a   :  { %3026 = vmatprep.subr.bf16.mxu0 %v3314_v34 }
 0x10d   :  { %3028 = vmatpush3.bf16.msra.mxu0 %v3551_v43  ;;  %v1619_v43 = vld [vmem:[%s4087_s7 + $0x8] sm:$0xff] }
 0x10e   :  { %3029 = vmatprep.subr.bf16.mxu0 %v3314_v34  ;;  %v1645_v11 = vand.u32 4294901760, %v1619_v43 }
 0x110   :  { %v3695_v30 = vsub.f32 %v1619_v43, %v1645_v11  ;;  %v3720_v43 = vsub.f32 %v1626_v61, %v1666_v28 }
 0x111   :  { %3031 = vmatpush3.bf16.msra.mxu0 %v3561_v56  ;;  %v1620_v56 = vld [vmem:[%s4087_s7 + $0x10] sm:$0xff] }
 0x112   :  { %3032 = vmatprep.subr.bf16.mxu0 %v3314_v34 }
 0x115   :  { %3034 = vmatpush3.bf16.msra.mxu0 %v3571_v3  ;;  %v1642_v3 = vand.u32 4294901760, %v1618_v35 }
 0x116   :  { %3035 = vmatprep.subr.bf16.mxu0 %v3314_v34 }
 0x117   :  { %v3691_v49 = vpack.c.bf16 %v1645_v11, %v1642_v3  ;;  %v3693_v5 = vsub.f32 %v1618_v35, %v1642_v3  ;;  %v3716_v35 = vsub.f32 %v1624_v60, %v1660_v27  ;;  %v3737_v11 = vpack.c.bf16 %v1663_v42, %v1660_v27 }
 0x118   :  { %v1742_v60 = vand.u32 4294901760, %v3695_v30 }
 0x119   :  { %3037 = vmatpush3.bf16.msra.mxu0 %v3581_v12  ;;  %v1621_v12 = vld [vmem:[%s4087_s7 + $0x18] sm:$0xff]  ;;  %3145 = vmatpush3.bf16.msra.mxu1 %v3691_v49 }
 0x11a   :  { %3038 = vmatprep.subr.bf16.mxu0 %v3314_v34  ;;  %3146 = vmatprep.subr.bf16.mxu1 %v3314_v34 }
 0x11d   :  { %3040 = vmatpush3.bf16.msra.mxu0 %v3591_v32  ;;  %v1648_v32 = vand.u32 4294901760, %v1620_v56 }
 0x11e   :  { %3041 = vmatprep.subr.bf16.mxu0 %v3314_v34 }
 0x11f   :  { %v3697_v31 = vsub.f32 %v1620_v56, %v1648_v32  ;;  %v3725_v56 = vsub.f32 %v1627_v50, %v1669_v2  ;;  %v1743_v50 = vsub.f32 %v3695_v30, %v1742_v60 }
 0x121   :  { %3043 = vmatpush3.bf16.msra.mxu0 %v3601_v57  ;;  %v1622_v57 = vld [vmem:[%s4087_s7 + $0x20] sm:$0xff] }
 0x122   :  { %3044 = vmatprep.subr.bf16.mxu0 %v3314_v34  ;;  %v1654_v47 = vand.u32 4294901760, %v1622_v57 }
 0x124   :  { %v3709_v54 = vsub.f32 %v1622_v57, %v1654_v47  ;;  %v4120_v57 = vand.u32 4294901760, %v3515_v17  ;;  %v4126_v17 = vand.u32 4294901760, %v3529_v24 }
 0x125   :  { %3046 = vmatpush3.bf16.msra.mxu0 %v3609_v6  ;;  %v1623_v6 = vld [vmem:[%s4087_s7 + $0x28] sm:$0xff] }
 0x126   :  { %3047 = vmatprep.subr.bf16.mxu0 %v3314_v34  ;;  %v1657_v46 = vand.u32 4294901760, %v1623_v6 }
 0x128   :  { %2647 = vmatmul.mubr.f32.vlgmr.msra.gmra.mrb[12].mxu0 %v3630_v1  ;;  %v3713_v40 = vsub.f32 %v1623_v6, %v1657_v46  ;;  %v3729_v3 = vpack.c.bf16 %v1657_v46, %v1654_v47 }
 0x129   :  { %3049 = vmatpush3.bf16.msra.mxu0 %v3048_v7  ;;  %2681 = vmatprep.mubr.msk.f32.mxu0 %vm3313_vm2, %v3312_v0  ;;  %v1651_v7 = vand.u32 4294901760, %v1621_v12 }
 0x12a   :  { %3050 = vmatprep.subr.bf16.mxu0 %v3314_v34 }
 0x12b   :  { %v3705_v10 = vpack.c.bf16 %v1651_v7, %v1648_v32  ;;  %v3707_v53 = vsub.f32 %v1621_v12, %v1651_v7 }
 0x12d   :  { %3052 = vmatpush3.bf16.msra.mxu0 %v3051_v8  ;;  %v3718_v8 = vsub.f32 %v1625_v63, %v1663_v42  ;;  %3148 = vmatpush3.bf16.msra.mxu1 %v3705_v10 }
 0x12e   :  { %3053 = vmatprep.subr.bf16.mxu0 %v3314_v34  ;;  %3149 = vmatprep.subr.bf16.mxu1 %v3314_v34 }
 0x131   :  { %3055 = vmatpush3.bf16.msra.mxu0 %v3054_v13  ;;  %3151 = vmatpush3.bf16.msra.mxu1 %v3729_v3  ;;  %v3745_v13 = vpack.c.bf16 %v1669_v2, %v1666_v28 }
 0x132   :  { %3056 = vmatprep.subr.bf16.mxu0 %v3314_v34  ;;  %3152 = vmatprep.subr.bf16.mxu1 %v3314_v34 }
 0x135   :  { %3058 = vmatpush3.bf16.msra.mxu0 %v3057_v25  ;;  %3154 = vmatpush3.bf16.msra.mxu1 %v3737_v11  ;;  %v4111_v25 = vand.u32 4294901760, %v3434_v37  ;;  %v4115_v37 = vand.u32 4294901760, %v3462_v51  ;;  %v4121_v51 = vand.u32 4294901760, %v3517_v18 }
 0x136   :  { %3059 = vmatprep.subr.bf16.mxu0 %v3314_v34  ;;  %3155 = vmatprep.subr.bf16.mxu1 %v3314_v34 }
 0x139   :  { %3061 = vmatpush3.bf16.msra.mxu0 %v3060_v26  ;;  %3157 = vmatpush3.bf16.msra.mxu1 %v3745_v13  ;;  %v4112_v26 = vand.u32 4294901760, %v3436_v38  ;;  %v4116_v38 = vand.u32 4294901760, %v3464_v52  ;;  %v4122_v52 = vand.u32 4294901760, %v3519_v19 }
 0x13a   :  { %3062 = vmatprep.subr.bf16.mxu0 %v3314_v34  ;;  %3158 = vmatprep.subr.bf16.mxu1 %v3314_v34 }
 0x13b   :  { %v3102_v32 = vpack.c.bf16 %v4116_v38, %v4115_v37  ;;  %v3111_v7 = vpack.c.bf16 %v4122_v52, %v4121_v51 }
 0x13d   :  { %3064 = vmatpush3.bf16.msra.mxu0 %v3063_v29  ;;  %v3096_v29 = vpack.c.bf16 %v4112_v26, %v4111_v25 }
 0x13e   :  { %3065 = vmatprep.subr.bf16.mxu0 %v3314_v34 }
 0x141   :  { %3067 = vmatpush3.bf16.msra.mxu0 %v3066_v36  ;;  %v4113_v36 = vand.u32 4294901760, %v3448_v44  ;;  %v4118_v44 = vand.u32 4294901760, %v3478_v59  ;;  %v4124_v59 = vand.u32 4294901760, %v3523_v21  ;;  %v1632_v21 = vld [vmem:[%s4087_s7 + $0x70] sm:$0xff] }
 0x142   :  { %3068 = vmatprep.subr.bf16.mxu0 %v3314_v34 }
 0x145   :  { %3070 = vmatpush3.bf16.msra.mxu0 %v3069_v39  ;;  %v4114_v39 = vand.u32 4294901760, %v3450_v45 }
 0x146   :  { %3071 = vmatprep.subr.bf16.mxu0 %v3314_v34 }
 0x147   :  { %v3099_v12 = vpack.c.bf16 %v4114_v39, %v4113_v36  ;;  %v1744_v36 = vand.u32 4294901760, %v1743_v50  ;;  %v1749_v39 = vand.u32 4294901760, %v3697_v31 }
 0x148   :  { %2682 = vmatmul.mubr.f32.vlgmr.msra.gmra.mrb[12].mxu0 %v3633_v14  ;;  %v4117_v14 = vand.u32 4294901760, %v3476_v58  ;;  %v4123_v58 = vand.u32 4294901760, %v3521_v20 }
 0x149   :  { %3073 = vmatpush3.bf16.msra.mxu0 %v3423_v33  ;;  %2716 = vmatprep.mubr.msk.f32.mxu0 %vm3313_vm2, %v3312_v0  ;;  %v1750_v38 = vsub.f32 %v3697_v31, %v1749_v39 }
 0x14a   :  { %3074 = vmatprep.subr.bf16.mxu0 %v3314_v34  ;;  %v3105_v45 = vpack.c.bf16 %v4118_v44, %v4117_v14  ;;  %v3114_v47 = vpack.c.bf16 %v4124_v59, %v4123_v58  ;;  %v1763_v14 = vand.u32 4294901760, %v3709_v54  ;;  %v1770_v44 = vand.u32 4294901760, %v3713_v40 }
 0x14b   :  { %v1777_v58 = vand.u32 4294901760, %v3716_v35  ;;  %v1784_v59 = vand.u32 4294901760, %v3718_v8 }
 0x14d   :  { %3076 = vmatpush3.bf16.msra.mxu0 %v3439_v41 }
 0x14e   :  { %3077 = vmatprep.subr.bf16.mxu0 %v3314_v34 }
 0x151   :  { %3079 = vmatpush3.bf16.msra.mxu0 %v3453_v48 }
 0x152   :  { %3080 = vmatprep.subr.bf16.mxu0 %v3314_v34 }
 0x155   :  { %3082 = vmatpush3.bf16.msra.mxu0 %v3467_v55 }
 0x156   :  { %3083 = vmatprep.subr.bf16.mxu0 %v3314_v34 }
 0x159   :  { %3085 = vmatpush3.bf16.msra.mxu0 %v3481_v62 }
 0x15a   :  { %3086 = vmatprep.subr.bf16.mxu0 %v3314_v34 }
 0x15d   :  { %3088 = vmatpush3.bf16.msra.mxu0 %v3491_v4 }
 0x15e   :  { %3089 = vmatprep.subr.bf16.mxu0 %v3314_v34 }
 0x161   :  { %3091 = vmatpush3.bf16.msra.mxu0 %v3501_v9 }
 0x162   :  { %3092 = vmatprep.subr.bf16.mxu0 %v3314_v34 }
 0x165   :  { %3094 = vmatpush3.bf16.msra.mxu0 %v3525_v22 }
 0x166   :  { %3095 = vmatprep.subr.bf16.mxu0 %v3314_v34 }
 0x168   :  { %2717 = vmatmul.mubr.f32.vlgmr.msra.gmra.mrb[12].mxu0 %v1059_v15  ;;  %v4119_v15 = vand.u32 4294901760, %v3513_v16  ;;  %v4125_v16 = vand.u32 4294901760, %v3527_v23  ;;  %v1684_v23 = vand.u32 4294901760, %v1632_v21 }
 0x169   :  { %3097 = vmatpush3.bf16.msra.mxu0 %v3096_v29  ;;  %2751 = vmatprep.mubr.msk.f32.mxu0 %vm3313_vm2, %v3312_v0 }
 0x16a   :  { %3098 = vmatprep.subr.bf16.mxu0 %v3314_v34  ;;  %v3108_v6 = vpack.c.bf16 %v4120_v57, %v4119_v15  ;;  %v3117_v46 = vpack.c.bf16 %v4126_v17, %v4125_v16  ;;  %v3889_v25 = vsub.f32 %v1632_v21, %v1684_v23  ;;  %v1764_v57 = vsub.f32 %v3709_v54, %v1763_v14 }
 0x16b   :  { %v1778_v16 = vsub.f32 %v3716_v35, %v1777_v58  ;;  %v1785_v17 = vsub.f32 %v3718_v8, %v1784_v59 }
 0x16c   :  { %v1765_v52 = vand.u32 4294901760, %v1764_v57 }
 0x16d   :  { %3100 = vmatpush3.bf16.msra.mxu0 %v3099_v12  ;;  %v1756_v12 = vand.u32 4294901760, %v3707_v53 }
 0x16e   :  { %3101 = vmatprep.subr.bf16.mxu0 %v3314_v34 }
 0x171   :  { %3103 = vmatpush3.bf16.msra.mxu0 %v3102_v32  ;;  %v1757_v32 = vsub.f32 %v3707_v53, %v1756_v12 }
 0x172   :  { %3104 = vmatprep.subr.bf16.mxu0 %v3314_v34 }
 0x173   :  { %v1758_v15 = vand.u32 4294901760, %v1757_v32 }
 0x175   :  { %3106 = vmatpush3.bf16.msra.mxu0 %v3105_v45  ;;  %v1751_v45 = vand.u32 4294901760, %v1750_v38 }
 0x176   :  { %3107 = vmatprep.subr.bf16.mxu0 %v3314_v34 }
 0x177   :  { %v3171_v51 = vpack.c.bf16 %v1758_v15, %v1751_v45 }
 0x179   :  { %3109 = vmatpush3.bf16.msra.mxu0 %v3108_v6  ;;  %v1771_v6 = vsub.f32 %v3713_v40, %v1770_v44 }
 0x17a   :  { %3110 = vmatprep.subr.bf16.mxu0 %v3314_v34 }
 0x17d   :  { %3112 = vmatpush3.bf16.msra.mxu0 %v3111_v7  ;;  %v1772_v7 = vand.u32 4294901760, %v1771_v6 }
 0x17e   :  { %3113 = vmatprep.subr.bf16.mxu0 %v3314_v34 }
 0x181   :  { %3115 = vmatpush3.bf16.msra.mxu0 %v3114_v47  ;;  %v3174_v47 = vpack.c.bf16 %v1772_v7, %v1765_v52  ;;  %v4108_v52 = vand.u32 4294901760, %v3889_v25 }
 0x182   :  { %3116 = vmatprep.subr.bf16.mxu0 %v3314_v34 }
 0x185   :  { %3118 = vmatpush3.bf16.msra.mxu0 %v3117_v46  ;;  %v1779_v46 = vand.u32 4294901760, %v1778_v16 }
 0x186   :  { %3119 = vmatprep.subr.bf16.mxu0 %v3314_v34 }
 0x188   :  { %2752 = vmatmul.mubr.f32.vlgmr.msra.gmra.mrb[12].mxu0 %v3630_v1 }
 0x189   :  { %3121 = vmatpush3.bf16.msra.mxu0 %v3423_v33  ;;  %2786 = vmatprep.mubr.msk.f32.mxu0 %vm3313_vm2, %v3312_v0  ;;  %v1628_v33 = vld [vmem:[%s4087_s7 + $0x50] sm:$0xff] }
 0x18a   :  { %3122 = vmatprep.subr.bf16.mxu0 %v3314_v34 }
 0x18d   :  { %3124 = vmatpush3.bf16.msra.mxu0 %v3439_v41  ;;  %v1629_v41 = vld [vmem:[%s4087_s7 + $0x58] sm:$0xff] }
 0x18e   :  { %3125 = vmatprep.subr.bf16.mxu0 %v3314_v34 }
 0x191   :  { %3127 = vmatpush3.bf16.msra.mxu0 %v3453_v48  ;;  %v1672_v48 = vand.u32 4294901760, %v1628_v33 }
 0x192   :  { %3128 = vmatprep.subr.bf16.mxu0 %v3314_v34 }
 0x193   :  { %v3880_v27 = vsub.f32 %v1628_v33, %v1672_v48  ;;  %v1786_v33 = vand.u32 4294901760, %v1785_v17  ;;  %v1834_v17 = vsub.f32 %v3889_v25, %v4108_v52 }
 0x195   :  { %3130 = vmatpush3.bf16.msra.mxu0 %v3467_v55  ;;  %v1675_v55 = vand.u32 4294901760, %v1629_v41  ;;  %v1805_v21 = vand.u32 4294901760, %v3880_v27 }
 0x196   :  { %3131 = vmatprep.subr.bf16.mxu0 %v3314_v34 }
 0x197   :  { %v3882_v42 = vsub.f32 %v1629_v41, %v1675_v55  ;;  %v1791_v41 = vand.u32 4294901760, %v3720_v43 }
 0x199   :  { %3133 = vmatpush3.bf16.msra.mxu0 %v3481_v62  ;;  %v3850_v62 = vpack.c.bf16 %v1675_v55, %v1672_v48  ;;  %v1798_v48 = vand.u32 4294901760, %v3725_v56  ;;  %v3177_v55 = vpack.c.bf16 %v1786_v33, %v1779_v46  ;;  %v1835_v33 = vand.u32 4294901760, %v1834_v17 }
 0x19a   :  { %3134 = vmatprep.subr.bf16.mxu0 %v3314_v34 }
 0x19b   :  { %3160 = vmatpush3.bf16.msra.mxu1 %v3850_v62 }
 0x19c   :  { %3161 = vmatprep.subr.bf16.mxu1 %v3314_v34 }
 0x19d   :  { %3136 = vmatpush3.bf16.msra.mxu0 %v3491_v4  ;;  %v1630_v4 = vld [vmem:[%s4087_s7 + $0x60] sm:$0xff] }
 0x19e   :  { %3137 = vmatprep.subr.bf16.mxu0 %v3314_v34  ;;  %v1678_v18 = vand.u32 4294901760, %v1630_v4 }
 0x1a0   :  { %v3884_v28 = vsub.f32 %v1630_v4, %v1678_v18  ;;  %v1792_v4 = vsub.f32 %v3720_v43, %v1791_v41 }
 0x1a1   :  { %3139 = vmatpush3.bf16.msra.mxu0 %v3501_v9  ;;  %v1631_v9 = vld [vmem:[%s4087_s7 + $0x68] sm:$0xff] }
 0x1a2   :  { %3140 = vmatprep.subr.bf16.mxu0 %v3314_v34  ;;  %v1681_v19 = vand.u32 4294901760, %v1631_v9 }
 0x1a4   :  { %v3860_v20 = vpack.c.bf16 %v1681_v19, %v1678_v18  ;;  %v3886_v2 = vsub.f32 %v1631_v9, %v1681_v19  ;;  %v1799_v9 = vsub.f32 %v3725_v56, %v1798_v48  ;;  %v1793_v18 = vand.u32 4294901760, %v1792_v4 }
 0x1a5   :  { %3142 = vmatpush3.bf16.msra.mxu0 %v3525_v22  ;;  %v1633_v22 = vld [vmem:[%s4087_s7 + $0x78] sm:$0xff] }
 0x1a6   :  { %3163 = vmatpush3.bf16.msra.mxu1 %v3860_v20  ;;  %v1687_v24 = vand.u32 4294901760, %v1633_v22  ;;  %v1800_v19 = vand.u32 4294901760, %v1799_v9  ;;  %v4109_v38 = vand.u32 4294901760, %v3886_v2 }
 0x1a7   :  { %3164 = vmatprep.subr.bf16.mxu1 %v3314_v34 }
 0x1a8   :  { %2787 = vmatmul.mubr.f32.vlgmr.msra.gmra.mrb[12].mxu0 %v3630_v1  ;;  %v1735_v1 = vand.u32 4294901760, %v3693_v5  ;;  %v3872_v63 = vpack.c.bf16 %v1687_v24, %v1684_v23  ;;  %v3891_v26 = vsub.f32 %v1633_v22, %v1687_v24  ;;  %v1812_v22 = vand.u32 4294901760, %v3882_v42 }
 0x1a9   :  { %v3180_v23 = vpack.c.bf16 %v1800_v19, %v1793_v18  ;;  %v1806_v24 = vsub.f32 %v3880_v27, %v1805_v21  ;;  %v1827_v15 = vsub.f32 %v3886_v2, %v4109_v38  ;;  %v3192_v18 = vpack.c.bf16 %v3695_v30, %v3693_v5 }
 0x1aa   :  { %v1736_v61 = vsub.f32 %v3693_v5, %v1735_v1  ;;  %3166 = vmatpush3.bf16.msra.mxu1 %v3872_v63  ;;  %v4107_v7 = vand.u32 4294901760, %v3891_v26  ;;  %v3195_v19 = vpack.c.bf16 %v3707_v53, %v3697_v31  ;;  %v3246_v5 = vpack.c.bf16 %v1770_v44, %v1763_v14 }
 0x1ab   :  { %3167 = vmatprep.subr.bf16.mxu1 %v3314_v34  ;;  %v1807_v50 = vand.u32 4294901760, %v1806_v24  ;;  %v1828_v6 = vand.u32 4294901760, %v1827_v15  ;;  %v3198_v24 = vpack.c.bf16 %v3713_v40, %v3709_v54  ;;  %v3213_v15 = vpack.c.bf16 %v3891_v26, %v3889_v25 }
 0x1ac   :  { %v1737_v29 = vand.u32 4294901760, %v1736_v61  ;;  %v1813_v61 = vsub.f32 %v3882_v42, %v1812_v22  ;;  %v1841_v46 = vsub.f32 %v3891_v26, %v4107_v7  ;;  %v3249_v30 = vpack.c.bf16 %v1784_v59, %v1777_v58 }
 0x1ad   :  { %v3252_v31 = vpack.c.bf16 %v1798_v48, %v1791_v41  ;;  %v3255_v53 = vpack.c.bf16 %v1812_v22, %v1805_v21  ;;  %v4127_v54 = vand.u32 4294901760, %v3884_v28  ;;  %v4128_v40 = vand.u32 4294901760, %v3886_v2 }
 0x1ae   :  { %v3896_v37 = vpack.c.bf16 %v1744_v36, %v1737_v29  ;;  %v1814_v29 = vand.u32 4294901760, %v1813_v61  ;;  %v4110_v36 = vand.u32 4294901760, %v3884_v28  ;;  %v1842_v4 = vand.u32 4294901760, %v1841_v46 }
 0x1af   :  { %v3201_v61 = vpack.c.bf16 %v3718_v8, %v3716_v35  ;;  %v3258_v35 = vpack.c.bf16 %v4128_v40, %v4127_v54  ;;  %v4129_v8 = vand.u32 4294901760, %v3889_v25 }
 0x1b0   :  { %v3183_v32 = vpack.c.bf16 %v1814_v29, %v1807_v50  ;;  %v1820_v45 = vsub.f32 %v3884_v28, %v4110_v36  ;;  %v3189_v9 = vpack.c.bf16 %v1842_v4, %v1835_v33  ;;  %v3204_v50 = vpack.c.bf16 %v3725_v56, %v3720_v43 }
 0x1b1   :  { %v3207_v29 = vpack.c.bf16 %v3882_v42, %v3880_v27  ;;  %v4130_v43 = vand.u32 4294901760, %v3891_v26 }
 0x1b2   :  { %v1821_v57 = vand.u32 4294901760, %v1820_v45  ;;  %v3210_v45 = vpack.c.bf16 %v3886_v2, %v3884_v28 }
 0x1b3   :  { %v3261_v56 = vpack.c.bf16 %v4130_v43, %v4129_v8 }
 0x1b4   :  { %v3186_v16 = vpack.c.bf16 %v1828_v6, %v1821_v57  ;;  %v2289_v57 = vld [vmem:[%s4088_s6] ss:$0 sm:$0xff] }
 0x27b   :  { %v1613_v6 = vpop.f32.mrb[12].mxu0 }
 0x27c   :  { %v3287_v17 = vadd.f32 %v2289_v57, %v1613_v6  ;;  %v2788_v46 = vpop.f32.mrb[13].mxu0 }
 0x27e   :  { %v1617_v33 = vmax.f32 %v3287_v17, 0.0 }
 0x280   :  { %v3971_v4 = vand.u32 4294901760, %v1617_v33 }
 0x282   :  { %v1723_v7 = vsub.f32 %v1617_v33, %v3971_v4 }
 0x284   :  { %v1724_v52 = vand.u32 4294901760, %v1723_v7 }
 0x286   :  { %v1725_v38 = vsub.f32 %v1723_v7, %v1724_v52 }
 0x288   :  { %v1726_v36 = vand.u32 4294901760, %v1725_v38 }
 0x28a   :  { %2822 = vmatmul.mubr.f32.vlgmr.msra.gmra.mrb[12].mxu1 %v1726_v36 }
 0x28b   :  { %3169 = vmatpush3.bf16.msra.mxu1 %v3896_v37  ;;  %2856 = vmatprep.mubr.msk.f32.mxu1 %vm3313_vm2, %v3312_v0  ;;  %v3240_v37 = vpack.c.bf16 %v1742_v60, %v1735_v1 }
 0x28c   :  { %3170 = vmatprep.subr.bf16.mxu1 %v3314_v34 }
 0x28f   :  { %3172 = vmatpush3.bf16.msra.mxu1 %v3171_v51  ;;  %v3243_v51 = vpack.c.bf16 %v1756_v12, %v1749_v39 }
 0x290   :  { %3173 = vmatprep.subr.bf16.mxu1 %v3314_v34 }
 0x293   :  { %3175 = vmatpush3.bf16.msra.mxu1 %v3174_v47 }
 0x294   :  { %3176 = vmatprep.subr.bf16.mxu1 %v3314_v34 }
 0x297   :  { %3178 = vmatpush3.bf16.msra.mxu1 %v3177_v55 }
 0x298   :  { %3179 = vmatprep.subr.bf16.mxu1 %v3314_v34 }
 0x29b   :  { %3181 = vmatpush3.bf16.msra.mxu1 %v3180_v23 }
 0x29c   :  { %3182 = vmatprep.subr.bf16.mxu1 %v3314_v34 }
 0x29f   :  { %3184 = vmatpush3.bf16.msra.mxu1 %v3183_v32 }
 0x2a0   :  { %3185 = vmatprep.subr.bf16.mxu1 %v3314_v34 }
 0x2a3   :  { %3187 = vmatpush3.bf16.msra.mxu1 %v3186_v16 }
 0x2a4   :  { %3188 = vmatprep.subr.bf16.mxu1 %v3314_v34 }
 0x2a7   :  { %3190 = vmatpush3.bf16.msra.mxu1 %v3189_v9 }
 0x2a8   :  { %3191 = vmatprep.subr.bf16.mxu1 %v3314_v34 }
 0x2aa   :  { %2857 = vmatmul.mubr.f32.vlgmr.msra.gmra.mrb[12].mxu1 %v3971_v4 }
 0x2ab   :  { %3193 = vmatpush3.bf16.msra.mxu1 %v3192_v18  ;;  %2891 = vmatprep.mubr.msk.f32.mxu1 %vm3313_vm2, %v3312_v0 }
 0x2ac   :  { %3194 = vmatprep.subr.bf16.mxu1 %v3314_v34 }
 0x2af   :  { %3196 = vmatpush3.bf16.msra.mxu1 %v3195_v19 }
 0x2b0   :  { %3197 = vmatprep.subr.bf16.mxu1 %v3314_v34 }
 0x2b3   :  { %3199 = vmatpush3.bf16.msra.mxu1 %v3198_v24 }
 0x2b4   :  { %3200 = vmatprep.subr.bf16.mxu1 %v3314_v34 }
 0x2b7   :  { %3202 = vmatpush3.bf16.msra.mxu1 %v3201_v61 }
 0x2b8   :  { %3203 = vmatprep.subr.bf16.mxu1 %v3314_v34 }
 0x2bb   :  { %3205 = vmatpush3.bf16.msra.mxu1 %v3204_v50 }
 0x2bc   :  { %3206 = vmatprep.subr.bf16.mxu1 %v3314_v34 }
 0x2bf   :  { %3208 = vmatpush3.bf16.msra.mxu1 %v3207_v29 }
 0x2c0   :  { %3209 = vmatprep.subr.bf16.mxu1 %v3314_v34 }
 0x2c3   :  { %3211 = vmatpush3.bf16.msra.mxu1 %v3210_v45 }
 0x2c4   :  { %3212 = vmatprep.subr.bf16.mxu1 %v3314_v34 }
 0x2c7   :  { %3214 = vmatpush3.bf16.msra.mxu1 %v3213_v15 }
 0x2c8   :  { %3215 = vmatprep.subr.bf16.mxu1 %v3314_v34 }
 0x2ca   :  { %2892 = vmatmul.mubr.f32.vlgmr.msra.gmra.mrb[12].mxu1 %v1723_v7 }
 0x2cb   :  { %3217 = vmatpush3.bf16.msra.mxu1 %v3691_v49  ;;  %2926 = vmatprep.mubr.msk.f32.mxu1 %vm3313_vm2, %v3312_v0 }
 0x2cc   :  { %3218 = vmatprep.subr.bf16.mxu1 %v3314_v34 }
 0x2cf   :  { %3220 = vmatpush3.bf16.msra.mxu1 %v3705_v10 }
 0x2d0   :  { %3221 = vmatprep.subr.bf16.mxu1 %v3314_v34 }
 0x2d3   :  { %3223 = vmatpush3.bf16.msra.mxu1 %v3729_v3 }
 0x2d4   :  { %3224 = vmatprep.subr.bf16.mxu1 %v3314_v34 }
 0x2d7   :  { %3226 = vmatpush3.bf16.msra.mxu1 %v3737_v11 }
 0x2d8   :  { %3227 = vmatprep.subr.bf16.mxu1 %v3314_v34 }
 0x2db   :  { %3229 = vmatpush3.bf16.msra.mxu1 %v3745_v13 }
 0x2dc   :  { %3230 = vmatprep.subr.bf16.mxu1 %v3314_v34 }
 0x2df   :  { %3232 = vmatpush3.bf16.msra.mxu1 %v3850_v62 }
 0x2e0   :  { %3233 = vmatprep.subr.bf16.mxu1 %v3314_v34 }
 0x2e3   :  { %3235 = vmatpush3.bf16.msra.mxu1 %v3860_v20 }
 0x2e4   :  { %3236 = vmatprep.subr.bf16.mxu1 %v3314_v34 }
 0x2e7   :  { %3238 = vmatpush3.bf16.msra.mxu1 %v3872_v63 }
 0x2e8   :  { %3239 = vmatprep.subr.bf16.mxu1 %v3314_v34 }
 0x2ea   :  { %2927 = vmatmul.mubr.f32.vlgmr.msra.gmra.mrb[12].mxu1 %v1724_v52 }
 0x2eb   :  { %3241 = vmatpush3.bf16.msra.mxu1 %v3240_v37  ;;  %2961 = vmatprep.mubr.msk.f32.mxu1 %vm3313_vm2, %v3312_v0 }
 0x2ec   :  { %3242 = vmatprep.subr.bf16.mxu1 %v3314_v34 }
 0x2ef   :  { %3244 = vmatpush3.bf16.msra.mxu1 %v3243_v51 }
 0x2f0   :  { %3245 = vmatprep.subr.bf16.mxu1 %v3314_v34 }
 0x2f3   :  { %3247 = vmatpush3.bf16.msra.mxu1 %v3246_v5 }
 0x2f4   :  { %3248 = vmatprep.subr.bf16.mxu1 %v3314_v34 }
 0x2f7   :  { %3250 = vmatpush3.bf16.msra.mxu1 %v3249_v30 }
 0x2f8   :  { %3251 = vmatprep.subr.bf16.mxu1 %v3314_v34 }
 0x2fb   :  { %3253 = vmatpush3.bf16.msra.mxu1 %v3252_v31 }
 0x2fc   :  { %3254 = vmatprep.subr.bf16.mxu1 %v3314_v34 }
 0x2ff   :  { %3256 = vmatpush3.bf16.msra.mxu1 %v3255_v53 }
 0x300   :  { %3257 = vmatprep.subr.bf16.mxu1 %v3314_v34 }
 0x303   :  { %3259 = vmatpush3.bf16.msra.mxu1 %v3258_v35 }
 0x304   :  { %3260 = vmatprep.subr.bf16.mxu1 %v3314_v34 }
 0x307   :  { %3262 = vmatpush3.bf16.msra.mxu1 %v3261_v56 }
 0x308   :  { %3263 = vmatprep.subr.bf16.mxu1 %v3314_v34 }
 0x30a   :  { %2962 = vmatmul.mubr.f32.vlgmr.msra.gmra.mrb[12].mxu1 %v3971_v4 }
 0x30b   :  { %3265 = vmatpush3.bf16.msra.mxu1 %v3691_v49  ;;  %2996 = vmatprep.mubr.msk.f32.mxu1 %vm3313_vm2, %v3312_v0  ;;  %v2290_v0 = vld [vmem:[%s4089_s8] ss:$0 sm:$0xff] }
 0x30c   :  { %3266 = vmatprep.subr.bf16.mxu1 %v3314_v34 }
 0x30f   :  { %3268 = vmatpush3.bf16.msra.mxu1 %v3705_v10 }
 0x310   :  { %3269 = vmatprep.subr.bf16.mxu1 %v3314_v34 }
 0x313   :  { %3271 = vmatpush3.bf16.msra.mxu1 %v3729_v3 }
 0x314   :  { %3272 = vmatprep.subr.bf16.mxu1 %v3314_v34 }
 0x317   :  { %3274 = vmatpush3.bf16.msra.mxu1 %v3737_v11 }
 0x318   :  { %3275 = vmatprep.subr.bf16.mxu1 %v3314_v34 }
 0x31b   :  { %3277 = vmatpush3.bf16.msra.mxu1 %v3745_v13 }
 0x31c   :  { %3278 = vmatprep.subr.bf16.mxu1 %v3314_v34 }
 0x31f   :  { %3280 = vmatpush3.bf16.msra.mxu1 %v3850_v62 }
 0x320   :  { %3281 = vmatprep.subr.bf16.mxu1 %v3314_v34 }
 0x323   :  { %3283 = vmatpush3.bf16.msra.mxu1 %v3860_v20 }
 0x324   :  { %3284 = vmatprep.subr.bf16.mxu1 %v3314_v34 }
 0x327   :  { %3286 = vmatpush3.bf16.msra.mxu1 %v3872_v63 }
 0x32a   :  { %2997 = vmatmul.mubr.f32.vlgmr.msra.gmra.mrb[12].mxu1 %v3971_v4 }
 0x3fd   :  { %v2278_v49 = vpop.f32.mrb[12].mxu1 }
 0x3fe   :  { %v3288_v10 = vadd.f32 %v2290_v0, %v2278_v49  ;;  %v2998_v3 = vpop.f32.mrb[13].mxu1 }
 0x400   :  { %2283 = vst.msk [vmem:[%s4090_s9] sm:$0xff] %vm2282_vm5, %v3288_v10 }

</bundles_post_ra>
